<compile_context>
chip_gen: v7x
topology: tpu7x:2x2x1
jax: 0.10.0
libtpu: 0.0.40
codegen_flags: <defaults>
</compile_context>

<pallas_src>
import functools

import jax
import jax.numpy as jnp
from jax import lax
from jax.experimental import pallas as pl
from jax.experimental.pallas import tpu as pltpu


# --------------------------------------------------------------------------
# Trace-time constant builders (tiny; run in the wrapper, not in the kernel)
# --------------------------------------------------------------------------
def _row_conv_weight(w_hwio, *, w_out, w_pad):
    """Toeplitz 'row conv' weight for the lane-dense layout.

    w_hwio : (3, 3, Ci, Co) 3x3 conv weight in HWIO (already BN-scaled if needed).
    Returns (3, w_pad*Ci, w_out*Co) with
        big[kh, (w+kw)*Ci + ci, w*Co + co] = w_hwio[kh, kw, ci, co]
    so that for a left-zero-padded lane-dense input row r (length w_pad*Ci),
    `r @ big[kh]` is the kh-tap contribution of one full output row (w_out*Co).
    """
    _, _, ci, co = w_hwio.shape
    j = jnp.arange(w_pad)[:, None]
    w = jnp.arange(w_out)[None, :]
    mask = jnp.stack([(j == w + kw) for kw in range(3)]).astype(jnp.float32)  # (3, w_pad, w_out)
    big = jnp.einsum("kjw,hkio->hjiwo", mask, w_hwio.astype(jnp.float32))
    return big.reshape(3, w_pad * ci, w_out * co)


def _pool_row_selector(H, Ho):
    """(Ho+2, H-1) one-hot: output row ho+1 picks vertical-max row 2*ho;
    rows 0 and Ho+1 are all-zero (they become the conv2 zero row-padding)."""
    i = jnp.arange(Ho + 2)[:, None]
    h = jnp.arange(H - 1)[None, :]
    return (h == 2 * (i - 1)).astype(jnp.float32)


def _pool_lane_selectors(W, Wo, Wp2, C):
    """Two (W*C, Wp2*C) one-hot maps: the even / odd source column of each 2x2
    pool window -> padded pooled lane (wo+1)*C + c.  max(x@even, x@odd) gives the
    horizontally pooled, zero-column-padded slab in one shot (exact selection)."""
    r = jnp.arange(W * C)
    q = jnp.arange(Wp2 * C)
    wr, cr = r // C, r % C
    jq, cq = q // C, q % C
    match = (cr[:, None] == cq[None, :]) & (jq[None, :] == wr[:, None] // 2 + 1)
    even = (match & (wr[:, None] % 2 == 0)).astype(jnp.float32)
    odd = (match & (wr[:, None] % 2 == 1)).astype(jnp.float32)
    return even, odd


# --------------------------------------------------------------------------
# The fused Pallas kernel: conv1 + foldedBN + ReLU + 2x2 maxpool + conv2 + ReLU
# --------------------------------------------------------------------------
def _fused_encoder_kernel(x_ref, w1_ref, s1_ref, sv_ref, re_ref, ro_ref,
                          w2_ref, b2_ref, o_ref, *, H, Ho, compute_dtype):
    # ---- conv1 (+ folded BN scale) as 3 fat row-matmuls, f32 accumulation ----
    # x_ref block: (1, H+2, Wp1*Cin), already zero-padded and in compute dtype.
    y1 = jnp.dot(x_ref[0, 0:H], w1_ref[0], preferred_element_type=jnp.float32)
    y1 += jnp.dot(x_ref[0, 1:H + 1], w1_ref[1], preferred_element_type=jnp.float32)
    y1 += jnp.dot(x_ref[0, 2:H + 2], w1_ref[2], preferred_element_type=jnp.float32)
    y1 = jnp.maximum(y1 + s1_ref[...], 0.0)            # (H, W*C1), lane-dense

    # ---- 2x2/2 max-pool entirely in registers ----
    # vertical pairwise max, then exact one-hot selection matmuls:
    #   sv: pick even rows + add zero row-padding   -> (Ho+2, W*C1)
    #   re/ro + max: pick even/odd columns + zero col-padding -> (Ho+2, Wp2*C1)
    vmax = jnp.maximum(y1[:-1], y1[1:]).astype(compute_dtype)      # (H-1, W*C1)
    le = jnp.dot(sv_ref[...], vmax,
                 preferred_element_type=jnp.float32).astype(compute_dtype)
    p = jnp.maximum(
        jnp.dot(le, re_ref[...], preferred_element_type=jnp.float32),
        jnp.dot(le, ro_ref[...], preferred_element_type=jnp.float32),
    ).astype(compute_dtype)                            # padded pooled slab

    # ---- conv2 + bias + ReLU as 3 fat row-matmuls ----
    y2 = jnp.dot(p[0:Ho], w2_ref[0], preferred_element_type=jnp.float32)
    y2 += jnp.dot(p[1:Ho + 1], w2_ref[1], preferred_element_type=jnp.float32)
    y2 += jnp.dot(p[2:Ho + 2], w2_ref[2], preferred_element_type=jnp.float32)
    y2 = jnp.maximum(y2 + b2_ref[...], 0.0)            # (Ho, Wo*C2), lane-dense

    o_ref[0] = y2.astype(o_ref.dtype)                  # single unmasked store


# --------------------------------------------------------------------------
# Encoder forward (wrapper: transpose + pad + trace-time constants + 1 kernel)
# --------------------------------------------------------------------------
def encoder_forward(x_nchw, params, *, compute_dtype=jnp.bfloat16, eps=1e-5):
    """Full Encoder forward. Returns NHWC feature map == enc_output.permute(0,2,3,1)."""
    x = jnp.transpose(x_nchw, (0, 2, 3, 1)).astype(jnp.float32)    # NCHW -> NHWC
    N, H, W, Cin = x.shape
    assert H % 2 == 0 and W % 2 == 0, "2x2 maxpool expects even H, W"
    Ho, Wo = H // 2, W // 2
    C1, C2 = params["w1"].shape[0], params["w2"].shape[0]
    Wp1, Wp2 = W + 2, Wo + 2

    # ---- fold BatchNorm (eval mode) into conv1 ----
    s = params["bn_gamma"] / jnp.sqrt(params["bn_var"] + eps)
    w1_hwio = jnp.transpose(params["w1"], (2, 3, 1, 0)) * s         # (3,3,Cin,C1)
    shift1 = (params["b1"] - params["bn_mean"]) * s + params["bn_beta"]
    w2_hwio = jnp.transpose(params["w2"], (2, 3, 1, 0))             # (3,3,C1,C2)

    # ---- trace-time constants (Toeplitz row-conv weights, pool selectors) ----
    w1big = _row_conv_weight(w1_hwio, w_out=W, w_pad=Wp1).astype(compute_dtype)
    w2big = _row_conv_weight(w2_hwio, w_out=Wo, w_pad=Wp2).astype(compute_dtype)
    sv = _pool_row_selector(H, Ho).astype(compute_dtype)
    re_m, ro_m = _pool_lane_selectors(W, Wo, Wp2, C1)
    re_m, ro_m = re_m.astype(compute_dtype), ro_m.astype(compute_dtype)
    s1 = jnp.tile(shift1, W).reshape(1, W * C1).astype(jnp.float32)
    b2 = jnp.tile(params["b2"], Wo).reshape(1, Wo * C2).astype(jnp.float32)

    # ---- lane-dense zero-padded input slab; compute dtype (bf16) in HBM ----
    xp = jnp.pad(x, ((0, 0), (1, 1), (1, 1), (0, 0)))
    xl = xp.reshape(N, H + 2, Wp1 * Cin).astype(compute_dtype)

    # ---- VMEM budget / cost hints ----
    cd_bytes = jnp.dtype(compute_dtype).itemsize
    wbytes = (w1big.size + w2big.size + sv.size + re_m.size + ro_m.size) * cd_bytes
    per_step = ((H + 2) * Wp1 * Cin * cd_bytes + wbytes
                + (s1.size + b2.size) * 4 + Ho * Wo * C2 * 4)
    vmem_limit = int(min(max(8 * per_step, 4 << 20), 32 << 20))    # safe v5e/v6e/v7x

    flops = N * (2 * 3 * H * (Wp1 * Cin) * (W * C1)
                 + 2 * (Ho + 2) * (H - 1) * (W * C1)
                 + 2 * 2 * (Ho + 2) * (W * C1) * (Wp2 * C1)
                 + 2 * 3 * Ho * (Wp2 * C1) * (Wo * C2))
    bytes_accessed = int(xl.size * cd_bytes + wbytes
                         + (s1.size + b2.size) * 4 + N * Ho * Wo * C2 * 4)

    kernel = functools.partial(_fused_encoder_kernel, H=H, Ho=Ho,
                               compute_dtype=compute_dtype)

    out = pl.pallas_call(
        kernel,
        out_shape=jax.ShapeDtypeStruct((N, Ho, Wo * C2), jnp.float32),
        grid=(N,),
        in_specs=[
            pl.BlockSpec((1, H + 2, Wp1 * Cin), lambda n: (n, 0, 0)),
            pl.BlockSpec(w1big.shape, lambda n: (0, 0, 0)),
            pl.BlockSpec(s1.shape, lambda n: (0, 0)),
            pl.BlockSpec(sv.shape, lambda n: (0, 0)),
            pl.BlockSpec(re_m.shape, lambda n: (0, 0)),
            pl.BlockSpec(ro_m.shape, lambda n: (0, 0)),
            pl.BlockSpec(w2big.shape, lambda n: (0, 0, 0)),
            pl.BlockSpec(b2.shape, lambda n: (0, 0)),
        ],
        out_specs=pl.BlockSpec((1, Ho, Wo * C2), lambda n: (n, 0, 0)),
        compiler_params=pltpu.CompilerParams(
            dimension_semantics=("parallel",),
            vmem_limit_bytes=vmem_limit),
        cost_estimate=pl.CostEstimate(flops=flops, transcendentals=0,
                                      bytes_accessed=bytes_accessed),
    )(xl, w1big, s1, sv, re_m, ro_m, w2big, b2)

    # (N, Ho, Wo*C2) -> (N, Ho, Wo, C2): contiguous split, free metadata reshape.
    return out.reshape(N, Ho, Wo, C2)


# --------------------------------------------------------------------------
# Pure-JAX reference (correctness check)
# --------------------------------------------------------------------------
def encoder_ref(x_nchw, params):
    x = jnp.transpose(x_nchw, (0, 2, 3, 1)).astype(jnp.float32)
    dn = ("NHWC", "HWIO", "NHWC")
    w1 = jnp.transpose(params["w1"], (2, 3, 1, 0))
    y = lax.conv_general_dilated(x, w1, (1, 1), ((1, 1), (1, 1)),
                                 dimension_numbers=dn) + params["b1"]
    s = params["bn_gamma"] / jnp.sqrt(params["bn_var"] + 1e-5)
    y = (y - params["bn_mean"]) * s + params["bn_beta"]
    y = jnp.maximum(y, 0.0)
    y = lax.reduce_window(y, -jnp.inf, lax.max, (1, 2, 2, 1), (1, 2, 2, 1), "VALID")
    w2 = jnp.transpose(params["w2"], (2, 3, 1, 0))
    y = lax.conv_general_dilated(y, w2, (1, 1), ((1, 1), (1, 1)),
                                 dimension_numbers=dn) + params["b2"]
    return jnp.maximum(y, 0.0)


# --------------------------------------------------------------------------
if __name__ == "__main__":
    key = jax.random.PRNGKey(0)
    ks = jax.random.split(key, 9)

    N, Cin, H, W = 2, 4, 16, 16
    C1, C2 = 8, 16

    params = {
        "w1": 0.1 * jax.random.normal(ks[0], (C1, Cin, 3, 3), jnp.float32),
        "b1": 0.1 * jax.random.normal(ks[1], (C1,), jnp.float32),
        "bn_gamma": 1.0 + 0.1 * jax.random.normal(ks[2], (C1,), jnp.float32),
        "bn_beta": 0.1 * jax.random.normal(ks[3], (C1,), jnp.float32),
        "bn_mean": 0.05 * jax.random.normal(ks[4], (C1,), jnp.float32),
        "bn_var": jax.random.uniform(ks[5], (C1,), jnp.float32, 0.5, 1.5),
        "w2": 0.1 * jax.random.normal(ks[6], (C2, C1, 3, 3), jnp.float32),
        "b2": 0.1 * jax.random.normal(ks[7], (C2,), jnp.float32),
    }
    x = jax.random.normal(ks[8], (N, Cin, H, W), jnp.float32)

    fwd_bf16 = jax.jit(functools.partial(encoder_forward, compute_dtype=jnp.bfloat16))
    fwd_f32 = jax.jit(functools.partial(encoder_forward, compute_dtype=jnp.float32))

    out_bf16 = jax.block_until_ready(fwd_bf16(x, params))
    out_f32 = jax.block_until_ready(fwd_f32(x, params))
    ref = jax.block_until_ready(encoder_ref(x, params))

    assert out_bf16.shape == (N, H // 2, W // 2, C2), out_bf16.shape
    # f32 compute path: algorithmic exactness vs the XLA reference.
    assert jnp.allclose(out_f32, ref, atol=2e-3, rtol=2e-3), "f32 path mismatch"
    # default bf16-MXU path: bf16 dot inputs + f32 accumulation -> looser tolerance.
    assert jnp.allclose(out_bf16, ref, atol=8e-2, rtol=5e-2), "bf16 path mismatch"
    print("KERNEL_OK")
</pallas_src>

<mosaic_0001>
module attributes {stable_mosaic.version = 11 : i64} {
  func.func @_fused_encoder_kernel(%arg0: i32, %arg1: memref<1x18x72xbf16, #tpu.memory_space<vmem>>, %arg2: memref<3x72x128xbf16, #tpu.memory_space<vmem>>, %arg3: memref<1x128xf32, #tpu.memory_space<vmem>>, %arg4: memref<10x15xbf16, #tpu.memory_space<vmem>>, %arg5: memref<128x80xbf16, #tpu.memory_space<vmem>>, %arg6: memref<128x80xbf16, #tpu.memory_space<vmem>>, %arg7: memref<3x80x128xbf16, #tpu.memory_space<vmem>>, %arg8: memref<1x128xf32, #tpu.memory_space<vmem>>, %arg9: memref<1x8x128xf32, #tpu.memory_space<vmem>>) attributes {dimension_semantics = [#tpu.dimension_semantics<parallel>], iteration_bounds = array<i64: 2>, scalar_prefetch = 0 : i64, scratch_operands = 0 : i64, tpu.core_type = #tpu.core_type<tc>, window_params = [{transform_indices = @transform_0, window_bounds = array<i64: 1, 18, 72>}, {pipeline_mode = #tpu.pipeline_mode<synchronous>, transform_indices = @transform_1, window_bounds = array<i64: 3, 72, 128>}, {pipeline_mode = #tpu.pipeline_mode<synchronous>, transform_indices = @transform_2, window_bounds = array<i64: 1, 128>}, {pipeline_mode = #tpu.pipeline_mode<synchronous>, transform_indices = @transform_3, window_bounds = array<i64: 10, 15>}, {pipeline_mode = #tpu.pipeline_mode<synchronous>, transform_indices = @transform_4, window_bounds = array<i64: 128, 80>}, {pipeline_mode = #tpu.pipeline_mode<synchronous>, transform_indices = @transform_5, window_bounds = array<i64: 128, 80>}, {pipeline_mode = #tpu.pipeline_mode<synchronous>, transform_indices = @transform_6, window_bounds = array<i64: 3, 80, 128>}, {pipeline_mode = #tpu.pipeline_mode<synchronous>, transform_indices = @transform_7, window_bounds = array<i64: 1, 128>}, {transform_indices = @transform_8, window_bounds = array<i64: 1, 8, 128>}]} {
    %c0 = arith.constant 0 : index
    %c0_0 = arith.constant 0 : index
    %c0_1 = arith.constant 0 : index
    %0 = vector.load %arg1[%c0, %c0_0, %c0_1] : memref<1x18x72xbf16, #tpu.memory_space<vmem>>, vector<1x16x72xbf16>
    %1 = vector.shape_cast %0 : vector<1x16x72xbf16> to vector<16x72xbf16>
    %c0_2 = arith.constant 0 : index
    %c0_3 = arith.constant 0 : index
    %c0_4 = arith.constant 0 : index
    %2 = vector.load %arg2[%c0_2, %c0_3, %c0_4] : memref<3x72x128xbf16, #tpu.memory_space<vmem>>, vector<1x72x128xbf16>
    %3 = vector.shape_cast %2 : vector<1x72x128xbf16> to vector<72x128xbf16>
    %cst = arith.constant dense<0.000000e+00> : vector<16x128xf32>
    %4 = tpu.matmul %1, %3, %cst {dimension_numbers = #tpu.dot_dimension_numbers<[1], [0], [0], [1], [0, 0, 1, 1], [], []>} : vector<16x72xbf16>, vector<72x128xbf16>, vector<16x128xf32> -> vector<16x128xf32>
    %c0_5 = arith.constant 0 : index
    %c1 = arith.constant 1 : index
    %c0_6 = arith.constant 0 : index
    %5 = vector.load %arg1[%c0_5, %c1, %c0_6] : memref<1x18x72xbf16, #tpu.memory_space<vmem>>, vector<1x16x72xbf16>
    %6 = vector.shape_cast %5 : vector<1x16x72xbf16> to vector<16x72xbf16>
    %c1_7 = arith.constant 1 : index
    %c0_8 = arith.constant 0 : index
    %c0_9 = arith.constant 0 : index
    %7 = vector.load %arg2[%c1_7, %c0_8, %c0_9] : memref<3x72x128xbf16, #tpu.memory_space<vmem>>, vector<1x72x128xbf16>
    %8 = vector.shape_cast %7 : vector<1x72x128xbf16> to vector<72x128xbf16>
    %cst_10 = arith.constant dense<0.000000e+00> : vector<16x128xf32>
    %9 = tpu.matmul %6, %8, %cst_10 {dimension_numbers = #tpu.dot_dimension_numbers<[1], [0], [0], [1], [0, 0, 1, 1], [], []>} : vector<16x72xbf16>, vector<72x128xbf16>, vector<16x128xf32> -> vector<16x128xf32>
    %10 = arith.addf %4, %9 : vector<16x128xf32>
    %c0_11 = arith.constant 0 : index
    %c2 = arith.constant 2 : index
    %c0_12 = arith.constant 0 : index
    %11 = vector.load %arg1[%c0_11, %c2, %c0_12] : memref<1x18x72xbf16, #tpu.memory_space<vmem>>, vector<1x16x72xbf16>
    %12 = vector.shape_cast %11 : vector<1x16x72xbf16> to vector<16x72xbf16>
    %c2_13 = arith.constant 2 : index
    %c0_14 = arith.constant 0 : index
    %c0_15 = arith.constant 0 : index
    %13 = vector.load %arg2[%c2_13, %c0_14, %c0_15] : memref<3x72x128xbf16, #tpu.memory_space<vmem>>, vector<1x72x128xbf16>
    %14 = vector.shape_cast %13 : vector<1x72x128xbf16> to vector<72x128xbf16>
    %cst_16 = arith.constant dense<0.000000e+00> : vector<16x128xf32>
    %15 = tpu.matmul %12, %14, %cst_16 {dimension_numbers = #tpu.dot_dimension_numbers<[1], [0], [0], [1], [0, 0, 1, 1], [], []>} : vector<16x72xbf16>, vector<72x128xbf16>, vector<16x128xf32> -> vector<16x128xf32>
    %16 = arith.addf %10, %15 : vector<16x128xf32>
    %c0_17 = arith.constant 0 : index
    %c0_18 = arith.constant 0 : index
    %17 = vector.load %arg3[%c0_17, %c0_18] : memref<1x128xf32, #tpu.memory_space<vmem>>, vector<1x128xf32>
    %18 = vector.broadcast %17 : vector<1x128xf32> to vector<16x128xf32>
    %19 = arith.addf %16, %18 : vector<16x128xf32>
    %cst_19 = arith.constant 0.000000e+00 : f32
    %20 = vector.broadcast %cst_19 : f32 to vector<16x128xf32>
    %21 = arith.maximumf %19, %20 : vector<16x128xf32>
    %22 = vector.extract_strided_slice %21 {offsets = [0, 0], sizes = [15, 128], strides = [1, 1]} : vector<16x128xf32> to vector<15x128xf32>
    %23 = vector.extract_strided_slice %21 {offsets = [1, 0], sizes = [15, 128], strides = [1, 1]} : vector<16x128xf32> to vector<15x128xf32>
    %24 = arith.maximumf %22, %23 : vector<15x128xf32>
    %25 = arith.truncf %24 : vector<15x128xf32> to vector<15x128xbf16>
    %c0_20 = arith.constant 0 : index
    %c0_21 = arith.constant 0 : index
    %26 = vector.load %arg4[%c0_20, %c0_21] : memref<10x15xbf16, #tpu.memory_space<vmem>>, vector<10x15xbf16>
    %cst_22 = arith.constant dense<0.000000e+00> : vector<10x128xf32>
    %27 = tpu.matmul %26, %25, %cst_22 {dimension_numbers = #tpu.dot_dimension_numbers<[1], [0], [0], [1], [0, 0, 1, 1], [], []>} : vector<10x15xbf16>, vector<15x128xbf16>, vector<10x128xf32> -> vector<10x128xf32>
    %28 = arith.truncf %27 : vector<10x128xf32> to vector<10x128xbf16>
    %c0_23 = arith.constant 0 : index
    %c0_24 = arith.constant 0 : index
    %29 = vector.load %arg5[%c0_23, %c0_24] : memref<128x80xbf16, #tpu.memory_space<vmem>>, vector<128x80xbf16>
    %cst_25 = arith.constant dense<0.000000e+00> : vector<10x80xf32>
    %30 = tpu.matmul %28, %29, %cst_25 {dimension_numbers = #tpu.dot_dimension_numbers<[1], [0], [0], [1], [0, 0, 1, 1], [], []>} : vector<10x128xbf16>, vector<128x80xbf16>, vector<10x80xf32> -> vector<10x80xf32>
    %c0_26 = arith.constant 0 : index
    %c0_27 = arith.constant 0 : index
    %31 = vector.load %arg6[%c0_26, %c0_27] : memref<128x80xbf16, #tpu.memory_space<vmem>>, vector<128x80xbf16>
    %cst_28 = arith.constant dense<0.000000e+00> : vector<10x80xf32>
    %32 = tpu.matmul %28, %31, %cst_28 {dimension_numbers = #tpu.dot_dimension_numbers<[1], [0], [0], [1], [0, 0, 1, 1], [], []>} : vector<10x128xbf16>, vector<128x80xbf16>, vector<10x80xf32> -> vector<10x80xf32>
    %33 = arith.maximumf %30, %32 : vector<10x80xf32>
    %34 = arith.truncf %33 : vector<10x80xf32> to vector<10x80xbf16>
    %35 = vector.extract_strided_slice %34 {offsets = [0, 0], sizes = [8, 80], strides = [1, 1]} : vector<10x80xbf16> to vector<8x80xbf16>
    %c0_29 = arith.constant 0 : index
    %c0_30 = arith.constant 0 : index
    %c0_31 = arith.constant 0 : index
    %36 = vector.load %arg7[%c0_29, %c0_30, %c0_31] : memref<3x80x128xbf16, #tpu.memory_space<vmem>>, vector<1x80x128xbf16>
    %37 = vector.shape_cast %36 : vector<1x80x128xbf16> to vector<80x128xbf16>
    %cst_32 = arith.constant dense<0.000000e+00> : vector<8x128xf32>
    %38 = tpu.matmul %35, %37, %cst_32 {dimension_numbers = #tpu.dot_dimension_numbers<[1], [0], [0], [1], [0, 0, 1, 1], [], []>} : vector<8x80xbf16>, vector<80x128xbf16>, vector<8x128xf32> -> vector<8x128xf32>
    %39 = vector.extract_strided_slice %34 {offsets = [1, 0], sizes = [8, 80], strides = [1, 1]} : vector<10x80xbf16> to vector<8x80xbf16>
    %c1_33 = arith.constant 1 : index
    %c0_34 = arith.constant 0 : index
    %c0_35 = arith.constant 0 : index
    %40 = vector.load %arg7[%c1_33, %c0_34, %c0_35] : memref<3x80x128xbf16, #tpu.memory_space<vmem>>, vector<1x80x128xbf16>
    %41 = vector.shape_cast %40 : vector<1x80x128xbf16> to vector<80x128xbf16>
    %cst_36 = arith.constant dense<0.000000e+00> : vector<8x128xf32>
    %42 = tpu.matmul %39, %41, %cst_36 {dimension_numbers = #tpu.dot_dimension_numbers<[1], [0], [0], [1], [0, 0, 1, 1], [], []>} : vector<8x80xbf16>, vector<80x128xbf16>, vector<8x128xf32> -> vector<8x128xf32>
    %43 = arith.addf %38, %42 : vector<8x128xf32>
    %44 = vector.extract_strided_slice %34 {offsets = [2, 0], sizes = [8, 80], strides = [1, 1]} : vector<10x80xbf16> to vector<8x80xbf16>
    %c2_37 = arith.constant 2 : index
    %c0_38 = arith.constant 0 : index
    %c0_39 = arith.constant 0 : index
    %45 = vector.load %arg7[%c2_37, %c0_38, %c0_39] : memref<3x80x128xbf16, #tpu.memory_space<vmem>>, vector<1x80x128xbf16>
    %46 = vector.shape_cast %45 : vector<1x80x128xbf16> to vector<80x128xbf16>
    %cst_40 = arith.constant dense<0.000000e+00> : vector<8x128xf32>
    %47 = tpu.matmul %44, %46, %cst_40 {dimension_numbers = #tpu.dot_dimension_numbers<[1], [0], [0], [1], [0, 0, 1, 1], [], []>} : vector<8x80xbf16>, vector<80x128xbf16>, vector<8x128xf32> -> vector<8x128xf32>
    %48 = arith.addf %43, %47 : vector<8x128xf32>
    %c0_41 = arith.constant 0 : index
    %c0_42 = arith.constant 0 : index
    %49 = vector.load %arg8[%c0_41, %c0_42] : memref<1x128xf32, #tpu.memory_space<vmem>>, vector<1x128xf32>
    %50 = vector.broadcast %49 : vector<1x128xf32> to vector<8x128xf32>
    %51 = arith.addf %48, %50 : vector<8x128xf32>
    %cst_43 = arith.constant 0.000000e+00 : f32
    %52 = vector.broadcast %cst_43 : f32 to vector<8x128xf32>
    %53 = arith.maximumf %51, %52 : vector<8x128xf32>
    %c0_44 = arith.constant 0 : index
    %c0_45 = arith.constant 0 : index
    %c0_46 = arith.constant 0 : index
    %54 = vector.load %arg9[%c0_44, %c0_45, %c0_46] : memref<1x8x128xf32, #tpu.memory_space<vmem>>, vector<1x8x128xf32>
    %55 = vector.shape_cast %54 : vector<1x8x128xf32> to vector<8x128xf32>
    %56 = vector.shape_cast %53 : vector<8x128xf32> to vector<1x8x128xf32>
    tpu.vector_store %arg9[%c0_44, %c0_45, %c0_46], %56 {strides = array<i32>} : memref<1x8x128xf32, #tpu.memory_space<vmem>>, vector<1x8x128xf32>,
    return
  }
  func.func @transform_0(%arg0: i32) -> (i32, i32, i32) {
    %c0_i32 = arith.constant 0 : i32
    %c0_i32_0 = arith.constant 0 : i32
    %c0_i32_1 = arith.constant 0 : i32
    return %arg0, %c0_i32, %c0_i32_0 : i32, i32, i32
  }
  func.func @transform_1(%arg0: i32) -> (i32, i32, i32) {
    %c0_i32 = arith.constant 0 : i32
    %c0_i32_0 = arith.constant 0 : i32
    %c0_i32_1 = arith.constant 0 : i32
    %c0_i32_2 = arith.constant 0 : i32
    return %c0_i32, %c0_i32_0, %c0_i32_1 : i32, i32, i32
  }
  func.func @transform_2(%arg0: i32) -> (i32, i32) {
    %c0_i32 = arith.constant 0 : i32
    %c0_i32_0 = arith.constant 0 : i32
    %c0_i32_1 = arith.constant 0 : i32
    return %c0_i32, %c0_i32_0 : i32, i32
  }
  func.func @transform_3(%arg0: i32) -> (i32, i32) {
    %c0_i32 = arith.constant 0 : i32
    %c0_i32_0 = arith.constant 0 : i32
    %c0_i32_1 = arith.constant 0 : i32
    return %c0_i32, %c0_i32_0 : i32, i32
  }
  func.func @transform_4(%arg0: i32) -> (i32, i32) {
    %c0_i32 = arith.constant 0 : i32
    %c0_i32_0 = arith.constant 0 : i32
    %c0_i32_1 = arith.constant 0 : i32
    return %c0_i32, %c0_i32_0 : i32, i32
  }
  func.func @transform_5(%arg0: i32) -> (i32, i32) {
    %c0_i32 = arith.constant 0 : i32
    %c0_i32_0 = arith.constant 0 : i32
    %c0_i32_1 = arith.constant 0 : i32
    return %c0_i32, %c0_i32_0 : i32, i32
  }
  func.func @transform_6(%arg0: i32) -> (i32, i32, i32) {
    %c0_i32 = arith.constant 0 : i32
    %c0_i32_0 = arith.constant 0 : i32
    %c0_i32_1 = arith.constant 0 : i32
    %c0_i32_2 = arith.constant 0 : i32
    return %c0_i32, %c0_i32_0, %c0_i32_1 : i32, i32, i32
  }
  func.func @transform_7(%arg0: i32) -> (i32, i32) {
    %c0_i32 = arith.constant 0 : i32
    %c0_i32_0 = arith.constant 0 : i32
    %c0_i32_1 = arith.constant 0 : i32
    return %c0_i32, %c0_i32_0 : i32, i32
  }
  func.func @transform_8(%arg0: i32) -> (i32, i32, i32) {
    %c0_i32 = arith.constant 0 : i32
    %c0_i32_0 = arith.constant 0 : i32
    %c0_i32_1 = arith.constant 0 : i32
    return %arg0, %c0_i32, %c0_i32_0 : i32, i32, i32
  }
}

</mosaic_0001>

<bundles_post_ra>
// kernel: tile.13
= control target key start
LH: loop header
LB: loop body
LE: loop exit
PB: predicated region body
PF: predicated region fallthrough
CT: control target
= control target key end

     0   :  { %s28_s0 = inlined_call_operand.vmem [shape: f32[8], index: 0, kind: input, shape index: {}]   ;;  %s29_s1 = inlined_call_operand.vmem [shape: f32[16,8], index: 1, kind: output, shape index: {}]  }
   0x1   :  { %v4_v0 = vld [vmem:[%s28_s0] ss:$0 sm:$0xff] }
   0x2   :  { %5 = vst [vmem:[%s29_s1] sm:$0xff] %v4_v0  ;;  %8 = vst [vmem:[%s29_s1 + $0x8] sm:$0xff] %v4_v0 }

// kernel: tile.14
= control target key start
LH: loop header
LB: loop body
LE: loop exit
PB: predicated region body
PF: predicated region fallthrough
CT: control target
= control target key end

     0   :  { %s131_s10 = smov 120   ;;  %s132_s11 = smov 104   ;;  %vm3_vm0 = vcmask 64512   ;;  %vm9_vm1 = vcmask 1048512   ;;  %vm15_vm2 = vcmask 982912   ;;  %vm21_vm3 = vcmask 917312   ;;  %s207_s0 = inlined_call_operand.vmem [shape: f32[16,8], index: 0, kind: input, shape index: {}]   ;;  %s208_s1 = inlined_call_operand.vmem [shape: f32[1,128], index: 1, kind: output, shape index: {}]  }
   0x1   :  { %v101_v0 = vld [vmem:[%s207_s0 + $0xf] sm:$0x1]   ;;  %v103_v1 = vld [vmem:[%s207_s0 + $0xd] sm:$0x1]   ;;  %v102_v2 = vld [vmem:[%s207_s0 + $0xe] sm:$0x1]  }
   0x2   :  { %7 = vrot.lane.b32.xlu0 %v101_v0, %s131_s10  ;;  %19 = vrot.lane.b32.xlu1 %v103_v1, %s132_s11  ;;  %v104_v3 = vld [vmem:[%s207_s0 + $0xc] sm:$0x1]   ;;  %s133_s16 = smov 112   ;;  %s134_s17 = smov 96   ;;  %v105_v4 = vld [vmem:[%s207_s0 + $0xb] sm:$0x1]  }
   0x3   :  { %v106_v5 = vld [vmem:[%s207_s0 + $0xa] sm:$0x1]   ;;  %v2_v6 = vld [vmem:[%s207_s0] sm:$0x1]   ;;  %s135_s24 = smov 88   ;;  %s136_s25 = smov 80  }
   0x4   :  { %4 = vst.msk [vmem:[#allocation0] sm:$0x1] %vm3_vm0, %v2_v6   ;;  %v107_v7 = vld [vmem:[%s207_s0 + $0x9] sm:$0x1]   ;;  %v108_v8 = vld [vmem:[%s207_s0 + $0x8] sm:$0x1]  }
   0x5   :  { %s137_s30 = smov 72   ;;  %s138_s2 = smov 64   ;;  %v109_v9 = vld [vmem:[%s207_s0 + $0x7] sm:$0x1]   ;;  %v110_v10 = vld [vmem:[%s207_s0 + $0x6] sm:$0x1]  }
   0x6   :  { %13 = vrot.lane.b32.xlu0 %v102_v2, %s133_s16  ;;  %25 = vrot.lane.b32.xlu1 %v104_v3, %s134_s17  ;;  %s139_s7 = smov 56   ;;  %s140_s8 = smov 48   ;;  %v111_v11 = vld [vmem:[%s207_s0 + $0x5] sm:$0x1]   ;;  %v112_v12 = vld [vmem:[%s207_s0 + $0x4] sm:$0x1]  }
   0x7   :  { %s141_s13 = smov 40   ;;  %s142_s14 = smov 32   ;;  %v113_v13 = vld [vmem:[%s207_s0 + $0x3] sm:$0x1]   ;;  %v114_v14 = vld [vmem:[%s207_s0 + $0x2] sm:$0x1]  }
   0x8   :  { %s143_s19 = smov 24   ;;  %s144_s20 = smov 16   ;;  %v115_v15 = vld [vmem:[%s207_s0 + $0x1] sm:$0x1]   ;;  %vm27_vm4 = vcmask 851712   ;;  %vm33_vm5 = vcmask 786112  }
   0x9   :  { %s145_s0 = smov 8   ;;  %vm39_vm6 = vcmask 720512   ;;  %vm45_vm7 = vcmask 654912   ;;  %vm51_vm8 = vcmask 589312   ;;  %vm57_vm9 = vcmask 523712  }
   0xa   :  { %31 = vrot.lane.b32.xlu0 %v105_v4, %s135_s24  ;;  %37 = vrot.lane.b32.xlu1 %v106_v5, %s136_s25  ;;  %vm63_vm10 = vcmask 458112   ;;  %vm69_vm11 = vcmask 392512   ;;  %vm75_vm12 = vcmask 326912   ;;  %vm81_vm13 = vcmask 261312  }
   0xb   :  { %vm87_vm14 = vcmask 195712   ;;  %vm93_vm15 = vcmask 130112  }
   0xe   :  { %43 = vrot.lane.b32.xlu0 %v107_v7, %s137_s30  ;;  %49 = vrot.lane.b32.xlu1 %v108_v8, %s138_s2 }
  0x12   :  { %55 = vrot.lane.b32.xlu0 %v109_v9, %s139_s7  ;;  %61 = vrot.lane.b32.xlu1 %v110_v10, %s140_s8 }
  0x16   :  { %67 = vrot.lane.b32.xlu0 %v111_v11, %s141_s13  ;;  %73 = vrot.lane.b32.xlu1 %v112_v12, %s142_s14 }
  0x1a   :  { %79 = vrot.lane.b32.xlu0 %v113_v13, %s143_s19  ;;  %85 = vrot.lane.b32.xlu1 %v114_v14, %s144_s20 }
  0x1e   :  { %91 = vrot.lane.b32.xlu0 %v115_v15, %s145_s0 }
  0x74   :  { %v8_v16 = vpop.permute.xlu0 %7   ;;  %v20_v17 = vpop.permute.xlu1 %19  }
  0x75   :  { %10 = vst.msk [vmem:[#allocation0] sm:$0x1] %vm9_vm1, %v8_v16  }
  0x78   :  { %v14_v18 = vpop.permute.xlu0 %13   ;;  %v26_v19 = vpop.permute.xlu1 %25  }
  0x79   :  { %16 = vst.msk [vmem:[#allocation0] sm:$0x1] %vm15_vm2, %v14_v18  }
  0x7a   :  { %22 = vst.msk [vmem:[#allocation0] sm:$0x1] %vm21_vm3, %v20_v17  }
  0x7b   :  { %28 = vst.msk [vmem:[#allocation0] sm:$0x1] %vm27_vm4, %v26_v19  }
  0x7c   :  { %v32_v20 = vpop.permute.xlu0 %31   ;;  %v38_v21 = vpop.permute.xlu1 %37  }
  0x7d   :  { %34 = vst.msk [vmem:[#allocation0] sm:$0x1] %vm33_vm5, %v32_v20  }
  0x7e   :  { %40 = vst.msk [vmem:[#allocation0] sm:$0x1] %vm39_vm6, %v38_v21  }
  0x80   :  { %v44_v22 = vpop.permute.xlu0 %43   ;;  %v50_v23 = vpop.permute.xlu1 %49  }
  0x81   :  { %46 = vst.msk [vmem:[#allocation0] sm:$0x1] %vm45_vm7, %v44_v22  }
  0x82   :  { %52 = vst.msk [vmem:[#allocation0] sm:$0x1] %vm51_vm8, %v50_v23  }
  0x84   :  { %v56_v24 = vpop.permute.xlu0 %55   ;;  %v62_v25 = vpop.permute.xlu1 %61  }
  0x85   :  { %58 = vst.msk [vmem:[#allocation0] sm:$0x1] %vm57_vm9, %v56_v24  }
  0x86   :  { %64 = vst.msk [vmem:[#allocation0] sm:$0x1] %vm63_vm10, %v62_v25  }
  0x88   :  { %v68_v26 = vpop.permute.xlu0 %67   ;;  %v74_v27 = vpop.permute.xlu1 %73  }
  0x89   :  { %70 = vst.msk [vmem:[#allocation0] sm:$0x1] %vm69_vm11, %v68_v26  }
  0x8a   :  { %76 = vst.msk [vmem:[#allocation0] sm:$0x1] %vm75_vm12, %v74_v27  }
  0x8c   :  { %v80_v28 = vpop.permute.xlu0 %79   ;;  %v86_v29 = vpop.permute.xlu1 %85  }
  0x8d   :  { %82 = vst.msk [vmem:[#allocation0] sm:$0x1] %vm81_vm13, %v80_v28  }
  0x8e   :  { %88 = vst.msk [vmem:[#allocation0] sm:$0x1] %vm87_vm14, %v86_v29  }
  0x90   :  { %v92_v30 = vpop.permute.xlu0 %91  }
  0x91   :  { %94 = vst.msk [vmem:[#allocation0] sm:$0x1] %vm93_vm15, %v92_v30  }
  0x98   :  { %v98_v31 = vld [vmem:[#allocation0] sm:$0x1] }
  0x99   :  { %100 = vst [vmem:[%s208_s1] sm:$0x1] %v98_v31 }

// kernel: tile.18
= control target key start
LH: loop header
LB: loop body
LE: loop exit
PB: predicated region body
PF: predicated region fallthrough
CT: control target
= control target key end

     0   :  { %s22_s0 = inlined_call_operand.vmem [shape: f32[16], index: 0, kind: input, shape index: {}]   ;;  %s23_s1 = inlined_call_operand.vmem [shape: f32[8,16], index: 1, kind: output, shape index: {}]  }
   0x1   :  { %v4_v0 = vld [vmem:[%s22_s0] ss:$0 sm:$0xff] }
   0x2   :  { %5 = vst [vmem:[%s23_s1] sm:$0xff] %v4_v0 }

// kernel: tile.19
= control target key start
LH: loop header
LB: loop body
LE: loop exit
PB: predicated region body
PF: predicated region fallthrough
CT: control target
= control target key end

     0   :  { %s67_s10 = smov 112   ;;  %s68_s11 = smov 80   ;;  %vm3_vm0 = vcmask 130048   ;;  %vm9_vm1 = vcmask 1048448   ;;  %vm15_vm2 = vcmask 917248   ;;  %vm21_vm3 = vcmask 786048   ;;  %s111_s0 = inlined_call_operand.vmem [shape: f32[8,16], index: 0, kind: input, shape index: {}]   ;;  %s112_s1 = inlined_call_operand.vmem [shape: f32[1,128], index: 1, kind: output, shape index: {}]  }
   0x1   :  { %v53_v0 = vld [vmem:[%s111_s0 + $0x7] sm:$0x1]   ;;  %v55_v1 = vld [vmem:[%s111_s0 + $0x5] sm:$0x1]   ;;  %v54_v2 = vld [vmem:[%s111_s0 + $0x6] sm:$0x1]  }
   0x2   :  { %7 = vrot.lane.b32.xlu0 %v53_v0, %s67_s10  ;;  %19 = vrot.lane.b32.xlu1 %v55_v1, %s68_s11  ;;  %v56_v3 = vld [vmem:[%s111_s0 + $0x4] sm:$0x1]   ;;  %v2_v4 = vld [vmem:[%s111_s0] sm:$0x1]   ;;  %s69_s18 = smov 96   ;;  %s70_s19 = smov 64  }
   0x3   :  { %4 = vst.msk [vmem:[#allocation0] sm:$0x1] %vm3_vm0, %v2_v4   ;;  %v57_v5 = vld [vmem:[%s111_s0 + $0x3] sm:$0x1]   ;;  %v58_v6 = vld [vmem:[%s111_s0 + $0x2] sm:$0x1]  }
   0x4   :  { %s71_s24 = smov 48   ;;  %s72_s25 = smov 32   ;;  %v59_v7 = vld [vmem:[%s111_s0 + $0x1] sm:$0x1]   ;;  %vm27_vm4 = vcmask 654848   ;;  %vm33_vm5 = vcmask 523648  }
   0x5   :  { %s73_s0 = smov 16   ;;  %vm39_vm6 = vcmask 392448   ;;  %vm45_vm7 = vcmask 261248  }
   0x6   :  { %13 = vrot.lane.b32.xlu0 %v54_v2, %s69_s18  ;;  %25 = vrot.lane.b32.xlu1 %v56_v3, %s70_s19 }
   0xa   :  { %31 = vrot.lane.b32.xlu0 %v57_v5, %s71_s24  ;;  %37 = vrot.lane.b32.xlu1 %v58_v6, %s72_s25 }
   0xe   :  { %43 = vrot.lane.b32.xlu0 %v59_v7, %s73_s0 }
  0x74   :  { %v8_v8 = vpop.permute.xlu0 %7   ;;  %v20_v9 = vpop.permute.xlu1 %19  }
  0x75   :  { %10 = vst.msk [vmem:[#allocation0] sm:$0x1] %vm9_vm1, %v8_v8  }
  0x78   :  { %v14_v10 = vpop.permute.xlu0 %13   ;;  %v26_v11 = vpop.permute.xlu1 %25  }
  0x79   :  { %16 = vst.msk [vmem:[#allocation0] sm:$0x1] %vm15_vm2, %v14_v10  }
  0x7a   :  { %22 = vst.msk [vmem:[#allocation0] sm:$0x1] %vm21_vm3, %v20_v9  }
  0x7b   :  { %28 = vst.msk [vmem:[#allocation0] sm:$0x1] %vm27_vm4, %v26_v11  }
  0x7c   :  { %v32_v12 = vpop.permute.xlu0 %31   ;;  %v38_v13 = vpop.permute.xlu1 %37  }
  0x7d   :  { %34 = vst.msk [vmem:[#allocation0] sm:$0x1] %vm33_vm5, %v32_v12  }
  0x7e   :  { %40 = vst.msk [vmem:[#allocation0] sm:$0x1] %vm39_vm6, %v38_v13  }
  0x80   :  { %v44_v14 = vpop.permute.xlu0 %43  }
  0x81   :  { %46 = vst.msk [vmem:[#allocation0] sm:$0x1] %vm45_vm7, %v44_v14  }
  0x88   :  { %v50_v15 = vld [vmem:[#allocation0] sm:$0x1] }
  0x89   :  { %52 = vst [vmem:[%s112_s1] sm:$0x1] %v50_v15 }

// kernel: encoder_forward.1
= control target key start
LH: loop header
LB: loop body
LE: loop exit
PB: predicated region body
PF: predicated region fallthrough
CT: control target
= control target key end

     0   :  { %s1619_s27 = smov 0   ;;  %s1865_s0 = inlined_call_operand.vmem [shape: bf16[2,18,72], index: 0, kind: input, shape index: {}]   ;;  %s1866_s1 = inlined_call_operand.vmem [shape: bf16[3,72,128], index: 1, kind: input, shape index: {}]   ;;  %s1867_s2 = inlined_call_operand.vmem [shape: f32[1,128], index: 2, kind: input, shape index: {}]   ;;  %s1868_s3 = inlined_call_operand.vmem [shape: bf16[10,15], index: 3, kind: input, shape index: {}]   ;;  %s1869_s4 = inlined_call_operand.vmem [shape: bf16[128,80], index: 4, kind: input, shape index: {}]   ;;  %s1870_s5 = inlined_call_operand.vmem [shape: bf16[128,80], index: 5, kind: input, shape index: {}]   ;;  %s1871_s6 = inlined_call_operand.vmem [shape: bf16[3,80,128], index: 6, kind: input, shape index: {}]   ;;  %s1872_s7 = inlined_call_operand.vmem [shape: f32[1,128], index: 7, kind: input, shape index: {}]   ;;  %s1873_s8 = inlined_call_operand.vmem [shape: f32[2,8,128], index: 8, kind: output, shape index: {}]  }
   0x1 LB: > { %s1209_s28 = sadd.s32 4294967295, %s1569_s27   ;;  %p1213_p0 = scmp.ge.s32.totalorder %s1569_s27, 1  ;;  %s1569_s27 = sphi %s1619_s27, %s18_s27  }
   0x2   : > { %p262_p1 = scmp.lt.s32.totalorder %s1569_s27, 3 }
   0x4   : > { %p263_p2 = pnand %p1213_p0, %p262_p1 }
   0x5   : > { %v1513_v0 = vld [vmem:[%s1866_s1 + $0x24] sm:$0xff] (!%p263_p2)   ;;  %v1571_v1 = vmov (!%p263_p2), 0.0   ;;  %v1515_v3 = vld [vmem:[%s1866_s1 + $0x2c] sm:$0xff] (!%p263_p2)   ;;  %p295_p3 = scmp.lt.s32.totalorder (!%p263_p2), %s1209_s28, 1  ;;  %vm1572_vm0 = vmmov (!%p263_p2), 0   ;;  %v1517_v5 = vld [vmem:[%s1866_s1 + $0x34] sm:$0xff] (!%p263_p2)  }
   0x6   : > { %266 = sbr.rel (%p263_p2) target bundleno = 958 (0x3be), region = 52  ;;  %1371 = vmatprep.subr.bf16.mxu0 (!%p263_p2), %v1571_v1  ;;  %1385 = vmatprep.subr.bf16.mxu1 (!%p263_p2), %v1571_v1  ;;  %v1514_v2 = vld [vmem:[%s1866_s1] sm:$0xff] (!%p263_p2)   ;;  %v1516_v4 = vld [vmem:[%s1866_s1 + $0x8] sm:$0xff] (!%p263_p2)   ;;  %v1518_v6 = vld [vmem:[%s1866_s1 + $0x10] sm:$0xff] (!%p263_p2)   ;;  %vm379_vm1 = vcmask (!%p263_p2), 1043456   ;;  %vm375_vm2 = vcmask (!%p263_p2), 588800  }
   0x7   : > { %1372 = vmatpush3.bf16.msra.mxu0 (!%p263_p2), %v1513_v0  ;;  %1386 = vmatpush3.bf16.msra.mxu1 (!%p263_p2), %v1514_v2  ;;  %v1519_v7 = vld [vmem:[%s1866_s1 + $0x3c] sm:$0xff] (!%p263_p2)   ;;  %v1521_v8 = vld [vmem:[%s1866_s1 + $0x44] ss:$0 sps:$4 sm:$0xff] (!%p263_p2)   ;;  %vm335_vm3 = vsmask.f32 (!%p263_p2), 7424  ;;  %v1525_v26 = vld [vmem:[%s1866_s1 + $0x48] sm:$0xff] (!%p263_p2)  }
   0x8   : > { %1373 = vmatprep.subr.bf16.mxu0 (!%p263_p2), %v1571_v1  ;;  %1387 = vmatprep.subr.bf16.mxu1 (!%p263_p2), %v1571_v1  ;;  %v1522_v9 = vld [vmem:[%s1866_s1 + $0x20] ss:$0 sps:$4 sm:$0xff] (!%p263_p2)   ;;  %v1520_v12 = vld [vmem:[%s1866_s1 + $0x18] sm:$0xff] (!%p263_p2)   ;;  %v381_v18 = vsel (!%p263_p2), %vm379_vm1, %v1521_v8, 0  ;;  %v1529_v22 = vld [vmem:[%s1866_s1 + $0x68] ss:$0 sps:$4 sm:$0xff] (!%p263_p2)  }
   0x9   : > { %1381 = vmatprep.mubr.msk.bf16.mxu0 (!%p263_p2), %vm1572_vm0, %v1571_v1  ;;  %1395 = vmatprep.mubr.msk.bf16.mxu1 (!%p263_p2), %vm1572_vm0, %v1571_v1  ;;  %v454_v19 = vsel (!%p263_p2), %vm379_vm1, %v1522_v9, 0  ;;  %v546_v29 = vsel (!%p263_p2), %vm379_vm1, %v1529_v22, 0  ;;  %v1526_v31 = vld [vmem:[%s1866_s1 + $0x50] sm:$0xff] (!%p263_p2)   ;;  %v1527_v32 = vld [vmem:[%s1866_s1 + $0x58] sm:$0xff] (!%p263_p2)   ;;  %vm511_vm4 = vcmask (!%p263_p2), 1046528   ;;  %v1528_v33 = vld [vmem:[%s1866_s1 + $0x60] sm:$0xff] (!%p263_p2)  }
   0xa   : > { %v1533_v35 = vld [vmem:[%s1870_s5] sm:$0xff] (!%p263_p2)   ;;  %v1535_v36 = vld [vmem:[%s1870_s5 + $0x8] sm:$0xff] (!%p263_p2)   ;;  %v1537_v37 = vld [vmem:[%s1870_s5 + $0x10] sm:$0xff] (!%p263_p2)   ;;  %vm624_vm5 = vcmask (!%p263_p2), 1047552   ;;  %v1573_v2 = vmov (!%p263_p2), 65535   ;;  %vm620_vm6 = vcmask (!%p263_p2), 121856  }
   0xb   : > { %1374 = vmatpush3.bf16.msra.mxu0 (!%p263_p2), %v1515_v3  ;;  %1388 = vmatpush3.bf16.msra.mxu1 (!%p263_p2), %v1516_v4  ;;  %v1539_v38 = vld [vmem:[%s1870_s5 + $0x18] sm:$0xff] (!%p263_p2)   ;;  %v1541_v39 = vld [vmem:[%s1870_s5 + $0x20] sm:$0xff] (!%p263_p2)   ;;  %v1543_v40 = vld [vmem:[%s1870_s5 + $0x28] sm:$0xff] (!%p263_p2)   ;;  %v625_v3 = vsel (!%p263_p2), %vm511_vm4, 4294967295, %v1573_v2  ;;  %vm943_vm7 = vcmask (!%p263_p2), 654336  }
   0xc   : > { %1375 = vmatprep.subr.bf16.mxu0 (!%p263_p2), %v1571_v1  ;;  %1389 = vmatprep.subr.bf16.mxu1 (!%p263_p2), %v1571_v1  ;;  %v1545_v41 = vld [vmem:[%s1870_s5 + $0x30] sm:$0xff] (!%p263_p2)   ;;  %v1255_v53 = vld [vmem:[%s1867_s2] ss:$0 sm:$0xff] (!%p263_p2) }
   0xd   : > { %s1875_s28 = smov (!%p295_p3, %s1209_s28), 1 }
   0xe   : > { %s1501_s19 = smul.u32 12, %s1875_s28  ;;  %s1215_s9 = sshll.u32 %s1875_s28, 3 }
   0xf   : > { %1376 = vmatpush3.bf16.msra.mxu0 %v1517_v5  ;;  %1390 = vmatpush3.bf16.msra.mxu1 %v1518_v6  ;;  %s303_s12 = scalar_lea.vmem %s1873_s8, %s1215_s9 }
  0x10   : > { %s299_s26 = scalar_lea.vmem %s1865_s0, %s1501_s19  ;;  %1377 = vmatprep.subr.bf16.mxu0 %v1571_v1  ;;  %1391 = vmatprep.subr.bf16.mxu1 %v1571_v1 }
  0x11   : > { %v305_v10 = vld [vmem:[%s299_s26] sm:$0xf]  ;;  %v306_v11 = vld [vmem:[%s299_s26 + $0x4] sm:$0xf] }
  0x12   : > { %v1225_v13 = vcombine.low %v305_v10, %v306_v11  ;;  %v1524_v14 = vld [vmem:[%s299_s26 + $0x8] ss:$0 sps:$4 sm:$0x11]   ;;  %v497_v23 = vld [vmem:[%s299_s26] sm:$0xe] }
  0x13   : > { %v344_v17 = vshll.u32 %v1524_v14, 16  ;;  %1378 = vmatpush3.bf16.msra.mxu0 %v1519_v7  ;;  %1392 = vmatpush3.bf16.msra.mxu1 %v1520_v12  ;;  %v1248_v25 = vcombine.low %v497_v23, %v306_v11  ;;  %v513_v27 = vrot.slane %v1524_v14, 1  ;;  %v626_v7 = vsel %vm624_vm5, %v625_v3, 0  ;;  %v1531_v10 = vld [vmem:[%s1868_s3] sm:$0x1f]   ;;  %v1534_v12 = vld [vmem:[%s1869_s4 + $0x8] sm:$0xff]  }
  0x14   : > { %v337_v15 = vshrl.u32 %v1225_v13, 16  ;;  %v339_v16 = vshll.u32 %v1225_v13, 16  ;;  %1379 = vmatprep.subr.bf16.mxu0 %v1571_v1  ;;  %1393 = vmatprep.subr.bf16.mxu1 %v1571_v1  ;;  %v1532_v11 = vld [vmem:[%s1869_s4] sm:$0xff]   ;;  %v1538_v14 = vld [vmem:[%s1869_s4 + $0x18] sm:$0xff]  }
  0x15   : > { %v346_v21 = vrot.slane %v344_v17, 1  ;;  %v512_v30 = vrot.slane %v1248_v25, 1  ;;  %v1544_v17 = vld [vmem:[%s1869_s4 + $0x30] sm:$0xff]   ;;  %v1548_v23 = vld [vmem:[%s1871_s6] sm:$0xff]  }
  0x16   : > { %v341_v20 = vrot.slane %v339_v16, 1  ;;  %v1542_v16 = vld [vmem:[%s1869_s4 + $0x28] sm:$0xff]   ;;  %v1312_v3 = vld [vmem:[%s1872_s7] ss:$0 sm:$0xff] }
  0x17   : > { %1380 = vmatpush3.bf16.msra.mxu0 %v381_v18  ;;  %1394 = vmatpush3.bf16.msra.mxu1 %v454_v19  ;;  %v514_v34 = vsel %vm511_vm4, %v512_v30, %v513_v27  ;;  %v1546_v18 = vld [vmem:[%s1869_s4 + $0x38] sm:$0xff]   ;;  %v1549_v27 = vld [vmem:[%s1871_s6 + $0x8] sm:$0xff]  }
  0x18   : > { %v342_v24 = vor.u32 %v341_v20, %v337_v15  ;;  %1399 = vmatprep.subr.bf16.mxu0 %v1571_v1  ;;  %1413 = vmatprep.subr.bf16.mxu1 %v1571_v1  ;;  %v1540_v15 = vld [vmem:[%s1869_s4 + $0x20] sm:$0xff]   ;;  %v1547_v19 = vld [vmem:[%s1870_s5 + $0x38] sm:$0xff]  }
  0x19   : > { %v1553_v30 = vld [vmem:[%s1871_s6 + $0x18] sm:$0xff]  }
  0x1a   : > { %v347_v28 = vsel %vm335_vm3, %v342_v24, %v346_v21  ;;  %1396 = vmatmul.mubr.msk.bf16.vlgmr.msra.gmra.mrb[0].mxu1 %vm375_vm2, %v1225_v13  ;;  %v1536_v13 = vld [vmem:[%s1869_s4 + $0x10] sm:$0xff]   ;;  %v1550_v24 = vld [vmem:[%s1871_s6 + $0x28] sm:$0xff]  }
  0x1b   : > { %1382 = vmatmul.mubr.msk.bf16.vlgmr.msra.gmra.mrb[0].mxu0 %vm375_vm2, %v347_v28  ;;  %1415 = vmatprep.mubr.msk.bf16.mxu1 %vm1572_vm0, %v1571_v1  ;;  %v1552_v28 = vld [vmem:[%s1871_s6 + $0x30] sm:$0xff]  }
  0x1c   : > { %1400 = vmatpush3.bf16.msra.mxu0 %v1525_v26  ;;  %1409 = vmatprep.mubr.msk.bf16.mxu0 %vm1572_vm0, %v1571_v1 }
  0x1d   : > { %1401 = vmatprep.subr.bf16.mxu0 %v1571_v1 }
  0x20   : > { %1402 = vmatpush3.bf16.msra.mxu0 %v1526_v31  ;;  %v1554_v31 = vld [vmem:[%s1871_s6 + $0x38] sm:$0xff]  }
  0x21   : > { %1403 = vmatprep.subr.bf16.mxu0 %v1571_v1 }
  0x24   : > { %1404 = vmatpush3.bf16.msra.mxu0 %v1527_v32  ;;  %v1555_v32 = vld [vmem:[%s1871_s6 + $0x20] sm:$0xff]  }
  0x25   : > { %1405 = vmatprep.subr.bf16.mxu0 %v1571_v1 }
  0x28   : > { %1406 = vmatpush3.bf16.msra.mxu0 %v1528_v33  ;;  %v1556_v33 = vld [vmem:[%s1871_s6 + $0x40] sm:$0xff]  }
  0x29   : > { %1407 = vmatprep.subr.bf16.mxu0 %v1571_v1 }
  0x2c   : > { %1408 = vmatpush3.bf16.msra.mxu0 %v546_v29  ;;  %v1551_v29 = vld [vmem:[%s1871_s6 + $0x10] sm:$0xff]  }
  0x2d   : > { %1439 = vmatprep.subr.bf16.mxu0 %v1571_v1 }
  0x2f   : > { %1410 = vmatmul.mubr.msk.bf16.vlgmr.msra.gmra.mrb[4].mxu0 %vm375_vm2, %v514_v34  ;;  %v1557_v34 = vld [vmem:[%s1871_s6 + $0x48] sm:$0xff]  }
  0x30   : > { %1455 = vmatprep.mubr.msk.bf16.mxu0 %vm1572_vm0, %v1571_v1  ;;  %1440 = vmatpush3.bf16.msra.mxu0 %v1533_v35 }
  0x31   : > { %1441 = vmatprep.subr.bf16.mxu0 %v1571_v1 }
  0x34   : > { %1442 = vmatpush3.bf16.msra.mxu0 %v1535_v36 }
  0x35   : > { %1443 = vmatprep.subr.bf16.mxu0 %v1571_v1 }
  0x38   : > { %1444 = vmatpush3.bf16.msra.mxu0 %v1537_v37 }
  0x39   : > { %1445 = vmatprep.subr.bf16.mxu0 %v1571_v1 }
  0x3c   : > { %1446 = vmatpush3.bf16.msra.mxu0 %v1539_v38 }
  0x3d   : > { %1447 = vmatprep.subr.bf16.mxu0 %v1571_v1 }
  0x40   : > { %1448 = vmatpush3.bf16.msra.mxu0 %v1541_v39 }
  0x41   : > { %1449 = vmatprep.subr.bf16.mxu0 %v1571_v1 }
  0x44   : > { %1450 = vmatpush3.bf16.msra.mxu0 %v1543_v40 }
  0x45   : > { %1451 = vmatprep.subr.bf16.mxu0 %v1571_v1 }
  0x48   : > { %1452 = vmatpush3.bf16.msra.mxu0 %v1545_v41 }
  0x49   : > { %1453 = vmatprep.subr.bf16.mxu0 %v1571_v1 }
  0x4c   : > { %1454 = vmatpush3.bf16.msra.mxu0 %v1547_v19 }
  0x4d   : > { %1473 = vmatprep.subr.bf16.mxu0 %v1571_v1 }
  0xed   : > { %v490_v43 = vpop.f32.mrb[0].mxu1 }
  0xee   : > { %v417_v42 = vpop.f32.mrb[0].mxu0  ;;  %v1397_v46 = vpop.f32.mrb[1].mxu1 }
  0xef   : > { %v1383_v44 = vpop.f32.mrb[1].mxu0  ;;  %v491_v45 = vadd.f32 %v490_v43, %v417_v42  ;;  %v493_v48 = vpop.f32.mrb[2].mxu1 }
  0xf0   : > { %v420_v47 = vpop.f32.mrb[2].mxu0  ;;  %v1398_v51 = vpop.f32.mrb[3].mxu1 }
  0xf1   : > { %v1384_v49 = vpop.f32.mrb[3].mxu0  ;;  %v494_v50 = vadd.f32 %v493_v48, %v420_v47  ;;  %v1559_v51 = vld [vmem:[%s1871_s6 + $0x58] sm:$0xff]  }
  0xf2   : > { %v1558_v49 = vld [vmem:[%s1871_s6 + $0x50] sm:$0xff]  }
 0x102   : > { %v582_v52 = vpop.f32.mrb[4].mxu0 }
 0x103   : > { %v589_v54 = vadd.f32 %v582_v52, %v491_v45  ;;  %v1411_v55 = vpop.f32.mrb[5].mxu0  ;;  %v1560_v52 = vld [vmem:[%s1871_s6 + $0x60] sm:$0xff]  }
 0x104   : > { %v585_v56 = vpop.f32.mrb[6].mxu0 }
 0x105   : > { %v598_v57 = vadd.f32 %v1255_v53, %v589_v54  ;;  %v590_v58 = vadd.f32 %v585_v56, %v494_v50  ;;  %v1412_v59 = vpop.f32.mrb[7].mxu0  ;;  %v1562_v54 = vld [vmem:[%s1871_s6 + $0x70] sm:$0xff]  }
 0x107   : > { %v600_v60 = vmax.f32 %v598_v57, 0.0  ;;  %v599_v61 = vadd.f32 %v1255_v53, %v590_v58  ;;  %v1561_v53 = vld [vmem:[%s1871_s6 + $0x68] sm:$0xff]  }
 0x109   : > { %v601_v62 = vmax.f32 %v599_v61, 0.0  ;;  %v605_v63 = vrot.slane %v600_v60, 1 }
 0x10b   : > { %v606_v0 = vrot.slane %v601_v62, 1 }
 0x10d   : > { %v607_v4 = vsel %vm511_vm4, %v605_v63, %v606_v0  ;;  %v611_v5 = vmax.f32 %v601_v62, %v606_v0 }
 0x10e   : > { %v610_v6 = vmax.f32 %v600_v60, %v607_v4 }
 0x110   : > { %v612_v8 = vpack.c.bf16 %v611_v5, %v610_v6 }
 0x112   : > { %v628_v9 = vand.u32 %v626_v7, %v612_v8 }
 0x114   : > { %1414 = vmatpush3.bf16.msra.mxu1 %v628_v9 }
 0x115   : > { %1419 = vmatprep.subr.bf16.mxu1 %v1571_v1 }
 0x117   : > { %1416 = vmatmul.mubr.msk.bf16.vlgmr.msra.gmra.mrb[4].mxu1 %vm620_vm6, %v1531_v10 }
 0x118   : > { %1420 = vmatpush3.bf16.msra.mxu1 %v1532_v11  ;;  %1435 = vmatprep.mubr.msk.bf16.mxu1 %vm1572_vm0, %v1571_v1 }
 0x119   : > { %1421 = vmatprep.subr.bf16.mxu1 %v1571_v1 }
 0x11c   : > { %1422 = vmatpush3.bf16.msra.mxu1 %v1534_v12 }
 0x11d   : > { %1423 = vmatprep.subr.bf16.mxu1 %v1571_v1 }
 0x120   : > { %1424 = vmatpush3.bf16.msra.mxu1 %v1536_v13 }
 0x121   : > { %1425 = vmatprep.subr.bf16.mxu1 %v1571_v1 }
 0x124   : > { %1426 = vmatpush3.bf16.msra.mxu1 %v1538_v14 }
 0x125   : > { %1427 = vmatprep.subr.bf16.mxu1 %v1571_v1 }
 0x128   : > { %1428 = vmatpush3.bf16.msra.mxu1 %v1540_v15 }
 0x129   : > { %1429 = vmatprep.subr.bf16.mxu1 %v1571_v1 }
 0x12c   : > { %1430 = vmatpush3.bf16.msra.mxu1 %v1542_v16 }
 0x12d   : > { %1431 = vmatprep.subr.bf16.mxu1 %v1571_v1 }
 0x130   : > { %1432 = vmatpush3.bf16.msra.mxu1 %v1544_v17 }
 0x131   : > { %1433 = vmatprep.subr.bf16.mxu1 %v1571_v1 }
 0x134   : > { %1434 = vmatpush3.bf16.msra.mxu1 %v1546_v18 }
 0x135   : > { %1459 = vmatprep.subr.bf16.mxu1 %v1571_v1 }
 0x1ea   : > { %v664_v20 = vpop.f32.mrb[4].mxu1 }
 0x1eb   : > { %v1417_v21 = vpop.f32.mrb[5].mxu1 }
 0x1ec   : > { %v667_v22 = vpop.f32.mrb[6].mxu1 }
 0x1ed   : > { %v671_v25 = vpack.c.bf16 %v667_v22, %v664_v20  ;;  %v1418_v26 = vpop.f32.mrb[7].mxu1 }
 0x1ef   : > { %1436 = vmatmul.mubr.bf16.vlgmr.msra.gmra.mrb[8].mxu1 %v671_v25  ;;  %1456 = vmatmul.mubr.bf16.vlgmr.msra.gmra.mrb[8].mxu0 %v671_v25 }
 0x1f0   : > { %1474 = vmatpush3.bf16.msra.mxu0 %v1548_v23  ;;  %1460 = vmatpush3.bf16.msra.mxu1 %v1550_v24 }
 0x1f1   : > { %1475 = vmatprep.subr.bf16.mxu0 %v1571_v1  ;;  %1461 = vmatprep.subr.bf16.mxu1 %v1571_v1 }
 0x1f2   : > { %1483 = vmatprep.mubr.msk.bf16.mxu0 %vm1572_vm0, %v1571_v1  ;;  %1469 = vmatprep.mubr.msk.bf16.mxu1 %vm1572_vm0, %v1571_v1 }
 0x1f4   : > { %1476 = vmatpush3.bf16.msra.mxu0 %v1549_v27  ;;  %1462 = vmatpush3.bf16.msra.mxu1 %v1552_v28 }
 0x1f5   : > { %1477 = vmatprep.subr.bf16.mxu0 %v1571_v1  ;;  %1463 = vmatprep.subr.bf16.mxu1 %v1571_v1 }
 0x1f8   : > { %1478 = vmatpush3.bf16.msra.mxu0 %v1551_v29  ;;  %1464 = vmatpush3.bf16.msra.mxu1 %v1554_v31 }
 0x1f9   : > { %1479 = vmatprep.subr.bf16.mxu0 %v1571_v1  ;;  %1465 = vmatprep.subr.bf16.mxu1 %v1571_v1 }
 0x1fc   : > { %1480 = vmatpush3.bf16.msra.mxu0 %v1553_v30  ;;  %1466 = vmatpush3.bf16.msra.mxu1 %v1556_v33 }
 0x1fd   : > { %1481 = vmatprep.subr.bf16.mxu0 %v1571_v1  ;;  %1467 = vmatprep.subr.bf16.mxu1 %v1571_v1 }
 0x200   : > { %1482 = vmatpush3.bf16.msra.mxu0 %v1555_v32  ;;  %1468 = vmatpush3.bf16.msra.mxu1 %v1557_v34 }
 0x201   : > { %1487 = vmatprep.subr.bf16.mxu1 %v1571_v1 }
 0x2c2   : > { %v770_v35 = vpop.f32.mrb[8].mxu1  ;;  %v875_v36 = vpop.f32.mrb[8].mxu0 }
 0x2c3   : > { %v882_v37 = vmax.f32 %v770_v35, %v875_v36  ;;  %v1437_v38 = vpop.f32.mrb[9].mxu1  ;;  %v1457_v39 = vpop.f32.mrb[9].mxu0 }
 0x2c4   : > { %v773_v40 = vpop.f32.mrb[10].mxu1  ;;  %v878_v41 = vpop.f32.mrb[10].mxu0 }
 0x2c5   : > { %v883_v42 = vmax.f32 %v773_v40, %v878_v41  ;;  %v1438_v43 = vpop.f32.mrb[11].mxu1  ;;  %v1458_v44 = vpop.f32.mrb[11].mxu0 }
 0x2c7   : > { %v884_v45 = vpack.c.bf16 %v883_v42, %v882_v37 }
 0x2c9   : > { %v909_v46 = vshll.u32 %v884_v45, 16  ;;  %1484 = vmatmul.mubr.msk.bf16.vlgmr.msra.gmra.mrb[12].mxu0 %vm943_vm7, %v884_v45  ;;  %v907_v47 = vshrl.u32 %v884_v45, 16  ;;  %v1071_v55 = vrot.slane %v884_v45, 1 }
 0x2cb   : > { %v911_v48 = vrot.slane %v909_v46, 1 }
 0x2cd   : > { %v912_v50 = vor.u32 %v911_v48, %v907_v47 }
 0x2cf   : > { %1470 = vmatmul.mubr.msk.bf16.vlgmr.msra.gmra.mrb[12].mxu1 %vm943_vm7, %v912_v50 }
 0x2d0   : > { %1488 = vmatpush3.bf16.msra.mxu1 %v1558_v49  ;;  %1497 = vmatprep.mubr.msk.bf16.mxu1 %vm1572_vm0, %v1571_v1 }
 0x2d1   : > { %1489 = vmatprep.subr.bf16.mxu1 %v1571_v1 }
 0x2d4   : > { %1490 = vmatpush3.bf16.msra.mxu1 %v1559_v51 }
 0x2d5   : > { %1491 = vmatprep.subr.bf16.mxu1 %v1571_v1 }
 0x2d8   : > { %1492 = vmatpush3.bf16.msra.mxu1 %v1560_v52 }
 0x2d9   : > { %1493 = vmatprep.subr.bf16.mxu1 %v1571_v1 }
 0x2dc   : > { %1494 = vmatpush3.bf16.msra.mxu1 %v1561_v53 }
 0x2dd   : > { %1495 = vmatprep.subr.bf16.mxu1 %v1571_v1 }
 0x2e0   : > { %1496 = vmatpush3.bf16.msra.mxu1 %v1562_v54 }
 0x2e3   : > { %1498 = vmatmul.mubr.msk.bf16.vlgmr.msra.gmra.mrb[16].mxu1 %vm943_vm7, %v1071_v55 }
 0x39c   : > { %v1053_v56 = vpop.f32.mrb[12].mxu0 }
 0x39d   : > { %v1485_v57 = vpop.f32.mrb[13].mxu0 }
 0x39e   : > { %v1056_v58 = vpop.f32.mrb[14].mxu0 }
 0x39f   : > { %v1486_v59 = vpop.f32.mrb[15].mxu0 }
 0x3a2   : > { %v981_v60 = vpop.f32.mrb[12].mxu1 }
 0x3a3   : > { %v1054_v61 = vadd.f32 %v1053_v56, %v981_v60  ;;  %v1471_v62 = vpop.f32.mrb[13].mxu1 }
 0x3a4   : > { %v984_v63 = vpop.f32.mrb[14].mxu1 }
 0x3a5   : > { %v1472_v0 = vpop.f32.mrb[15].mxu1 }
 0x3b6   : > { %v1139_v2 = vpop.f32.mrb[16].mxu1 }
 0x3b7   : > { %v1145_v1 = vadd.f32 %v1139_v2, %v1054_v61  ;;  %v1499_v4 = vpop.f32.mrb[17].mxu1 }
 0x3b8   : > { %v1142_v5 = vpop.f32.mrb[18].mxu1 }
 0x3b9   : > { %v1153_v6 = vadd.f32 %v1312_v3, %v1145_v1  ;;  %v1500_v7 = vpop.f32.mrb[19].mxu1 }
 0x3bb   : > { %v1154_v8 = vmax.f32 %v1153_v6, 0.0 }
 0x3bd   : > { %1155 = vst [vmem:[%s303_s12] sm:$0xff] %v1154_v8 }
 0x3be PF: > { %s18_s27 = sadd.s32 1, %s1569_s27  }
 0x3bf   : > { %p15_p4 = scmp.ge.s32.totalorder %s18_s27, 4  }
 0x3c1   :  { %17 = sbr.rel (!%p15_p4) target bundleno = 1 (0x1), region = 86 }

</bundles_post_ra>
